<compile_context>
chip_gen: v7x
topology: tpu7x:2x2x1
jax: 0.10.0
libtpu: 0.0.40
codegen_flags: <defaults>
</compile_context>

<pallas_src>
import math

import jax
import jax.numpy as jnp
from jax import lax
from jax.experimental import pallas as pl
from jax.experimental.pallas import tpu as pltpu

BN_EPS = 1e-5  # nn.BatchNorm1d default eps


# ---------------------------------------------------------------------------
# Kernel 1: input->hidden projection as one dense matmul.
#   out = x2d @ Wx + b        x2d: (M=S*2B, E), Wx: (E, H), b: (1, H)
# Grid only over M tiles (independent rows -> "parallel"); Wx/b resident.
# ---------------------------------------------------------------------------
def _projection_kernel(x_ref, w_ref, b_ref, o_ref):
    o_ref[...] = (jnp.dot(x_ref[...], w_ref[...],
                          preferred_element_type=jnp.float32)
                  + b_ref[...]).astype(o_ref.dtype)


def run_projection(x2d, wx, b, *, max_tile=256):
    M, E = x2d.shape
    H = wx.shape[1]
    # Pick the largest power-of-two row tile (<= max_tile) that divides M;
    # at the demo shapes (M = 64) this is one full-slab grid step.
    tm = max_tile
    while tm > 8 and M % tm != 0:
        tm //= 2
    if M % tm != 0:
        tm = M
    return pl.pallas_call(
        _projection_kernel,
        out_shape=jax.ShapeDtypeStruct((M, H), jnp.float32),
        grid_spec=pltpu.PrefetchScalarGridSpec(
            num_scalar_prefetch=0,
            grid=(M // tm,),
            in_specs=[
                pl.BlockSpec((tm, E), lambda i: (i, 0)),
                pl.BlockSpec((E, H), lambda i: (0, 0)),
                pl.BlockSpec((1, H), lambda i: (0, 0)),
            ],
            out_specs=pl.BlockSpec((tm, H), lambda i: (i, 0)),
        ),
        compiler_params=pltpu.CompilerParams(
            dimension_semantics=("parallel",)),
    )(x2d, wx, b)


# ---------------------------------------------------------------------------
# Kernel 2: fused recurrence + classifier head (single grid step).
#   h_t  = relu(xproj_t + h_{t-1} @ Wh)            (unrolled in-kernel loop)
#   feat = cat([p, h, p-h, p*h], -1)               (B, 4H)   -- Merger
#   a1   = relu(feat @ W1f + b1f)                  (BN1 folded into W1f/b1f)
#   out  = a1 @ W2f + b2f                          (BN2 folded into W2f/b2f)
# Dropout layers are identity at inference.
# ---------------------------------------------------------------------------
def _encoder_head_kernel(xp_ref, wh_ref, w1_ref, b1_ref, w2_ref, b2_ref, o_ref):
    S, BB, H = xp_ref.shape
    B = BB // 2

    def step(t, h):
        z = xp_ref[t] + jnp.dot(h, wh_ref[...],
                                preferred_element_type=jnp.float32)
        return jnp.maximum(z, 0.0)

    h = lax.fori_loop(0, S, step, jnp.zeros((BB, H), jnp.float32), unroll=True)

    prem = h[:B]
    hypo = h[B:]
    feat = jnp.concatenate([prem, hypo, prem - hypo, prem * hypo], axis=1)
    a1 = jnp.maximum(
        jnp.dot(feat, w1_ref[...], preferred_element_type=jnp.float32)
        + b1_ref[...], 0.0)
    out = (jnp.dot(a1, w2_ref[...], preferred_element_type=jnp.float32)
           + b2_ref[...])
    o_ref[...] = out.astype(o_ref.dtype)


def run_encoder_head(xproj, p):
    S, BB, H = xproj.shape
    B = BB // 2
    F2 = p['w2f'].shape[1]
    vspec = pl.BlockSpec(memory_space=pltpu.MemorySpace.VMEM)
    return pl.pallas_call(
        _encoder_head_kernel,
        out_shape=jax.ShapeDtypeStruct((B, F2), jnp.float32),
        in_specs=[vspec] * 6,
        out_specs=vspec,
    )(xproj, p['wh'], p['w1f'], p['b1f'], p['w2f'], p['b2f'])


# ---------------------------------------------------------------------------
# Parameters (PyTorch-style init) with eval-mode BatchNorm folded into Linears.
# ---------------------------------------------------------------------------
def init_params(key, vocab_dim, embed_dim, hidden_size, fc1_dim, fc2_dim):
    ks = jax.random.split(key, 4)
    embed = jax.random.normal(ks[0], (vocab_dim, embed_dim), jnp.float32)

    def linear(k, fan_in, fan_out):
        bound = 1.0 / math.sqrt(fan_in)
        kw, kb = jax.random.split(k)
        w = jax.random.uniform(kw, (fan_in, fan_out), jnp.float32, -bound, bound)
        b = jax.random.uniform(kb, (1, fan_out), jnp.float32, -bound, bound)
        return w, b

    # RNNCell.input2hidden: Linear(E + H, H) acting on cat([x, h], -1).
    w_ih, b_ih = linear(ks[1], embed_dim + hidden_size, hidden_size)
    w1, b1 = linear(ks[2], 4 * hidden_size, fc1_dim)
    w2, b2 = linear(ks[3], fc1_dim, fc2_dim)

    # Untrained eval-mode BatchNorm1d: running_mean=0, running_var=1, affine=id.
    inv = 1.0 / math.sqrt(1.0 + BN_EPS)
    s1 = jnp.full((4 * hidden_size,), inv, jnp.float32)
    t1 = jnp.zeros((4 * hidden_size,), jnp.float32)
    s2 = jnp.full((fc1_dim,), inv, jnp.float32)
    t2 = jnp.zeros((fc1_dim,), jnp.float32)

    # Fold BN into the following Linear:  (x*s + t) @ W + b = x @ (s[:,None]*W) + (t @ W + b)
    w1f = w1 * s1[:, None]
    b1f = b1 + (t1 @ w1)[None, :]
    w2f = w2 * s2[:, None]
    b2f = b2 + (t2 @ w2)[None, :]

    return {
        'embed': embed,
        'wx': w_ih[:embed_dim],            # (E, H): multiplies x part of cat
        'wh': w_ih[embed_dim:],            # (H, H): multiplies h part of cat
        'b_ih': b_ih,                      # (1, H)
        'w1f': w1f, 'b1f': b1f,            # BN1-folded Linear(4H -> F1)
        'w2f': w2f, 'b2f': b2f,            # BN2-folded Linear(F1 -> F2)
        # Raw params kept only for the pure-JAX reference check:
        'w1': w1, 'b1': b1, 'w2': w2, 'b2': b2,
        'bn1_scale': s1[None, :], 'bn1_shift': t1[None, :],
        'bn2_scale': s2[None, :], 'bn2_shift': t2[None, :],
    }


def rnn_classifier_forward(params, premise, hypothesis):
    """premise / hypothesis: (seq_len, batch) int32 token ids (torchtext order)."""
    S, B = premise.shape
    # ONE embedding gather over both sentences (shared encoder weights).
    tokens = jnp.concatenate([premise, hypothesis], axis=1)          # (S, 2B)
    x = params['embed'][tokens]                                      # (S, 2B, E)
    E = x.shape[-1]
    H = params['wh'].shape[0]
    xproj = run_projection(x.reshape(S * 2 * B, E),
                           params['wx'], params['b_ih'])             # (S*2B, H)
    return run_encoder_head(xproj.reshape(S, 2 * B, H), params)      # (B, F2)


# ---------------------------------------------------------------------------
# Pure-JAX reference (statement-by-statement translation of the torch module,
# with un-folded BatchNorm) used as a correctness check.
# ---------------------------------------------------------------------------
def reference_forward(params, premise, hypothesis):
    emb = params['embed']
    w_ih = jnp.concatenate([params['wx'], params['wh']], axis=0)     # (E+H, H)

    def encode(tokens):
        x = emb[tokens]                                              # (S, B, E)
        h = jnp.zeros((x.shape[1], params['wh'].shape[0]), jnp.float32)
        for t in range(x.shape[0]):
            comb = jnp.concatenate([x[t], h], axis=1)
            h = jax.nn.relu(comb @ w_ih + params['b_ih'])
        return h

    p = encode(premise)
    q = encode(hypothesis)
    feat = jnp.concatenate([p, q, p - q, p * q], axis=1)
    feat = feat * params['bn1_scale'] + params['bn1_shift']
    a1 = jax.nn.relu(feat @ params['w1'] + params['b1'])
    a1 = a1 * params['bn2_scale'] + params['bn2_shift']
    return a1 @ params['w2'] + params['b2']


if __name__ == "__main__":
    vocab_dim, embed_dim, hidden_size = 100, 32, 32
    fc1_dim, fc2_dim = 64, 4
    seq_len, batch = 8, 4

    key = jax.random.PRNGKey(0)
    pkey, k1, k2 = jax.random.split(key, 3)
    params = init_params(pkey, vocab_dim, embed_dim, hidden_size, fc1_dim, fc2_dim)
    premise = jax.random.randint(k1, (seq_len, batch), 0, vocab_dim, dtype=jnp.int32)
    hypothesis = jax.random.randint(k2, (seq_len, batch), 0, vocab_dim, dtype=jnp.int32)

    fwd = jax.jit(rnn_classifier_forward)
    scores = fwd(params, premise, hypothesis)
    jax.block_until_ready(scores)

    assert scores.shape == (batch, fc2_dim), scores.shape
    assert scores.dtype == jnp.float32
    assert bool(jnp.all(jnp.isfinite(scores)))

    ref = reference_forward(params, premise, hypothesis)
    assert bool(jnp.allclose(scores, ref, atol=2e-2, rtol=2e-2)), (
        float(jnp.max(jnp.abs(scores - ref))))

    print("KERNEL_OK")
</pallas_src>

<mosaic_0001>
module attributes {stable_mosaic.version = 11 : i64} {
  func.func @_projection_kernel(%arg0: i32, %arg1: memref<64x32xf32, #tpu.memory_space<vmem>>, %arg2: memref<32x32xf32, #tpu.memory_space<vmem>>, %arg3: memref<1x32xf32, #tpu.memory_space<vmem>>, %arg4: memref<64x32xf32, #tpu.memory_space<vmem>>) attributes {dimension_semantics = [#tpu.dimension_semantics<parallel>], iteration_bounds = array<i64: 1>, scalar_prefetch = 0 : i64, scratch_operands = 0 : i64, tpu.core_type = #tpu.core_type<tc>, window_params = [{transform_indices = @transform_0, window_bounds = array<i64: 64, 32>}, {pipeline_mode = #tpu.pipeline_mode<synchronous>, transform_indices = @transform_1, window_bounds = array<i64: 32, 32>}, {pipeline_mode = #tpu.pipeline_mode<synchronous>, transform_indices = @transform_2, window_bounds = array<i64: 1, 32>}, {transform_indices = @transform_3, window_bounds = array<i64: 64, 32>}]} {
    %c0 = arith.constant 0 : index
    %c0_0 = arith.constant 0 : index
    %0 = vector.load %arg1[%c0, %c0_0] : memref<64x32xf32, #tpu.memory_space<vmem>>, vector<64x32xf32>
    %c0_1 = arith.constant 0 : index
    %c0_2 = arith.constant 0 : index
    %1 = vector.load %arg2[%c0_1, %c0_2] : memref<32x32xf32, #tpu.memory_space<vmem>>, vector<32x32xf32>
    %cst = arith.constant dense<0.000000e+00> : vector<64x32xf32>
    %2 = tpu.matmul %0, %1, %cst {dimension_numbers = #tpu.dot_dimension_numbers<[1], [0], [0], [1], [0, 0, 1, 1], [], []>} : vector<64x32xf32>, vector<32x32xf32>, vector<64x32xf32> -> vector<64x32xf32>
    %c0_3 = arith.constant 0 : index
    %c0_4 = arith.constant 0 : index
    %3 = vector.load %arg3[%c0_3, %c0_4] : memref<1x32xf32, #tpu.memory_space<vmem>>, vector<1x32xf32>
    %4 = vector.broadcast %3 : vector<1x32xf32> to vector<64x32xf32>
    %5 = arith.addf %2, %4 : vector<64x32xf32>
    %c0_5 = arith.constant 0 : index
    %c0_6 = arith.constant 0 : index
    %6 = vector.load %arg4[%c0_5, %c0_6] : memref<64x32xf32, #tpu.memory_space<vmem>>, vector<64x32xf32>
    tpu.vector_store %arg4[%c0_5, %c0_6], %5 {strides = array<i32>} : memref<64x32xf32, #tpu.memory_space<vmem>>, vector<64x32xf32>,
    return
  }
  func.func @transform_0(%arg0: i32) -> (i32, i32) {
    %c0_i32 = arith.constant 0 : i32
    %c0_i32_0 = arith.constant 0 : i32
    return %arg0, %c0_i32 : i32, i32
  }
  func.func @transform_1(%arg0: i32) -> (i32, i32) {
    %c0_i32 = arith.constant 0 : i32
    %c0_i32_0 = arith.constant 0 : i32
    %c0_i32_1 = arith.constant 0 : i32
    return %c0_i32, %c0_i32_0 : i32, i32
  }
  func.func @transform_2(%arg0: i32) -> (i32, i32) {
    %c0_i32 = arith.constant 0 : i32
    %c0_i32_0 = arith.constant 0 : i32
    %c0_i32_1 = arith.constant 0 : i32
    return %c0_i32, %c0_i32_0 : i32, i32
  }
  func.func @transform_3(%arg0: i32) -> (i32, i32) {
    %c0_i32 = arith.constant 0 : i32
    %c0_i32_0 = arith.constant 0 : i32
    return %arg0, %c0_i32 : i32, i32
  }
}

module attributes {stable_mosaic.version = 11 : i64} {
  func.func @_encoder_head_kernel(%arg0: memref<8x8x32xf32, #tpu.memory_space<vmem>>, %arg1: memref<32x32xf32, #tpu.memory_space<vmem>>, %arg2: memref<128x64xf32, #tpu.memory_space<vmem>>, %arg3: memref<1x64xf32, #tpu.memory_space<vmem>>, %arg4: memref<64x4xf32, #tpu.memory_space<vmem>>, %arg5: memref<1x4xf32, #tpu.memory_space<vmem>>, %arg6: memref<4x4xf32, #tpu.memory_space<vmem>>) attributes {dimension_semantics = [], scalar_prefetch = 0 : i64, scratch_operands = 0 : i64, tpu.core_type = #tpu.core_type<tc>} {
    %cst = arith.constant 0.000000e+00 : f32
    %0 = vector.broadcast %cst : f32 to vector<8x32xf32>
    %c0_i32 = arith.constant 0 : i32
    %1 = arith.index_cast %c0_i32 : i32 to index
    %c0 = arith.constant 0 : index
    %c0_0 = arith.constant 0 : index
    %2 = vector.load %arg0[%1, %c0, %c0_0] : memref<8x8x32xf32, #tpu.memory_space<vmem>>, vector<1x8x32xf32>
    %3 = vector.shape_cast %2 : vector<1x8x32xf32> to vector<8x32xf32>
    %c0_1 = arith.constant 0 : index
    %c0_2 = arith.constant 0 : index
    %4 = vector.load %arg1[%c0_1, %c0_2] : memref<32x32xf32, #tpu.memory_space<vmem>>, vector<32x32xf32>
    %cst_3 = arith.constant dense<0.000000e+00> : vector<8x32xf32>
    %5 = tpu.matmul %0, %4, %cst_3 {dimension_numbers = #tpu.dot_dimension_numbers<[1], [0], [0], [1], [0, 0, 1, 1], [], []>} : vector<8x32xf32>, vector<32x32xf32>, vector<8x32xf32> -> vector<8x32xf32>
    %6 = arith.addf %3, %5 : vector<8x32xf32>
    %cst_4 = arith.constant 0.000000e+00 : f32
    %7 = vector.broadcast %cst_4 : f32 to vector<8x32xf32>
    %8 = arith.maximumf %6, %7 : vector<8x32xf32>
    %c1_i32 = arith.constant 1 : i32
    %9 = arith.index_cast %c1_i32 : i32 to index
    %c0_5 = arith.constant 0 : index
    %c0_6 = arith.constant 0 : index
    %10 = vector.load %arg0[%9, %c0_5, %c0_6] : memref<8x8x32xf32, #tpu.memory_space<vmem>>, vector<1x8x32xf32>
    %11 = vector.shape_cast %10 : vector<1x8x32xf32> to vector<8x32xf32>
    %c0_7 = arith.constant 0 : index
    %c0_8 = arith.constant 0 : index
    %12 = vector.load %arg1[%c0_7, %c0_8] : memref<32x32xf32, #tpu.memory_space<vmem>>, vector<32x32xf32>
    %cst_9 = arith.constant dense<0.000000e+00> : vector<8x32xf32>
    %13 = tpu.matmul %8, %12, %cst_9 {dimension_numbers = #tpu.dot_dimension_numbers<[1], [0], [0], [1], [0, 0, 1, 1], [], []>} : vector<8x32xf32>, vector<32x32xf32>, vector<8x32xf32> -> vector<8x32xf32>
    %14 = arith.addf %11, %13 : vector<8x32xf32>
    %cst_10 = arith.constant 0.000000e+00 : f32
    %15 = vector.broadcast %cst_10 : f32 to vector<8x32xf32>
    %16 = arith.maximumf %14, %15 : vector<8x32xf32>
    %c2_i32 = arith.constant 2 : i32
    %17 = arith.index_cast %c2_i32 : i32 to index
    %c0_11 = arith.constant 0 : index
    %c0_12 = arith.constant 0 : index
    %18 = vector.load %arg0[%17, %c0_11, %c0_12] : memref<8x8x32xf32, #tpu.memory_space<vmem>>, vector<1x8x32xf32>
    %19 = vector.shape_cast %18 : vector<1x8x32xf32> to vector<8x32xf32>
    %c0_13 = arith.constant 0 : index
    %c0_14 = arith.constant 0 : index
    %20 = vector.load %arg1[%c0_13, %c0_14] : memref<32x32xf32, #tpu.memory_space<vmem>>, vector<32x32xf32>
    %cst_15 = arith.constant dense<0.000000e+00> : vector<8x32xf32>
    %21 = tpu.matmul %16, %20, %cst_15 {dimension_numbers = #tpu.dot_dimension_numbers<[1], [0], [0], [1], [0, 0, 1, 1], [], []>} : vector<8x32xf32>, vector<32x32xf32>, vector<8x32xf32> -> vector<8x32xf32>
    %22 = arith.addf %19, %21 : vector<8x32xf32>
    %cst_16 = arith.constant 0.000000e+00 : f32
    %23 = vector.broadcast %cst_16 : f32 to vector<8x32xf32>
    %24 = arith.maximumf %22, %23 : vector<8x32xf32>
    %c3_i32 = arith.constant 3 : i32
    %25 = arith.index_cast %c3_i32 : i32 to index
    %c0_17 = arith.constant 0 : index
    %c0_18 = arith.constant 0 : index
    %26 = vector.load %arg0[%25, %c0_17, %c0_18] : memref<8x8x32xf32, #tpu.memory_space<vmem>>, vector<1x8x32xf32>
    %27 = vector.shape_cast %26 : vector<1x8x32xf32> to vector<8x32xf32>
    %c0_19 = arith.constant 0 : index
    %c0_20 = arith.constant 0 : index
    %28 = vector.load %arg1[%c0_19, %c0_20] : memref<32x32xf32, #tpu.memory_space<vmem>>, vector<32x32xf32>
    %cst_21 = arith.constant dense<0.000000e+00> : vector<8x32xf32>
    %29 = tpu.matmul %24, %28, %cst_21 {dimension_numbers = #tpu.dot_dimension_numbers<[1], [0], [0], [1], [0, 0, 1, 1], [], []>} : vector<8x32xf32>, vector<32x32xf32>, vector<8x32xf32> -> vector<8x32xf32>
    %30 = arith.addf %27, %29 : vector<8x32xf32>
    %cst_22 = arith.constant 0.000000e+00 : f32
    %31 = vector.broadcast %cst_22 : f32 to vector<8x32xf32>
    %32 = arith.maximumf %30, %31 : vector<8x32xf32>
    %c4_i32 = arith.constant 4 : i32
    %33 = arith.index_cast %c4_i32 : i32 to index
    %c0_23 = arith.constant 0 : index
    %c0_24 = arith.constant 0 : index
    %34 = vector.load %arg0[%33, %c0_23, %c0_24] : memref<8x8x32xf32, #tpu.memory_space<vmem>>, vector<1x8x32xf32>
    %35 = vector.shape_cast %34 : vector<1x8x32xf32> to vector<8x32xf32>
    %c0_25 = arith.constant 0 : index
    %c0_26 = arith.constant 0 : index
    %36 = vector.load %arg1[%c0_25, %c0_26] : memref<32x32xf32, #tpu.memory_space<vmem>>, vector<32x32xf32>
    %cst_27 = arith.constant dense<0.000000e+00> : vector<8x32xf32>
    %37 = tpu.matmul %32, %36, %cst_27 {dimension_numbers = #tpu.dot_dimension_numbers<[1], [0], [0], [1], [0, 0, 1, 1], [], []>} : vector<8x32xf32>, vector<32x32xf32>, vector<8x32xf32> -> vector<8x32xf32>
    %38 = arith.addf %35, %37 : vector<8x32xf32>
    %cst_28 = arith.constant 0.000000e+00 : f32
    %39 = vector.broadcast %cst_28 : f32 to vector<8x32xf32>
    %40 = arith.maximumf %38, %39 : vector<8x32xf32>
    %c5_i32 = arith.constant 5 : i32
    %41 = arith.index_cast %c5_i32 : i32 to index
    %c0_29 = arith.constant 0 : index
    %c0_30 = arith.constant 0 : index
    %42 = vector.load %arg0[%41, %c0_29, %c0_30] : memref<8x8x32xf32, #tpu.memory_space<vmem>>, vector<1x8x32xf32>
    %43 = vector.shape_cast %42 : vector<1x8x32xf32> to vector<8x32xf32>
    %c0_31 = arith.constant 0 : index
    %c0_32 = arith.constant 0 : index
    %44 = vector.load %arg1[%c0_31, %c0_32] : memref<32x32xf32, #tpu.memory_space<vmem>>, vector<32x32xf32>
    %cst_33 = arith.constant dense<0.000000e+00> : vector<8x32xf32>
    %45 = tpu.matmul %40, %44, %cst_33 {dimension_numbers = #tpu.dot_dimension_numbers<[1], [0], [0], [1], [0, 0, 1, 1], [], []>} : vector<8x32xf32>, vector<32x32xf32>, vector<8x32xf32> -> vector<8x32xf32>
    %46 = arith.addf %43, %45 : vector<8x32xf32>
    %cst_34 = arith.constant 0.000000e+00 : f32
    %47 = vector.broadcast %cst_34 : f32 to vector<8x32xf32>
    %48 = arith.maximumf %46, %47 : vector<8x32xf32>
    %c6_i32 = arith.constant 6 : i32
    %49 = arith.index_cast %c6_i32 : i32 to index
    %c0_35 = arith.constant 0 : index
    %c0_36 = arith.constant 0 : index
    %50 = vector.load %arg0[%49, %c0_35, %c0_36] : memref<8x8x32xf32, #tpu.memory_space<vmem>>, vector<1x8x32xf32>
    %51 = vector.shape_cast %50 : vector<1x8x32xf32> to vector<8x32xf32>
    %c0_37 = arith.constant 0 : index
    %c0_38 = arith.constant 0 : index
    %52 = vector.load %arg1[%c0_37, %c0_38] : memref<32x32xf32, #tpu.memory_space<vmem>>, vector<32x32xf32>
    %cst_39 = arith.constant dense<0.000000e+00> : vector<8x32xf32>
    %53 = tpu.matmul %48, %52, %cst_39 {dimension_numbers = #tpu.dot_dimension_numbers<[1], [0], [0], [1], [0, 0, 1, 1], [], []>} : vector<8x32xf32>, vector<32x32xf32>, vector<8x32xf32> -> vector<8x32xf32>
    %54 = arith.addf %51, %53 : vector<8x32xf32>
    %cst_40 = arith.constant 0.000000e+00 : f32
    %55 = vector.broadcast %cst_40 : f32 to vector<8x32xf32>
    %56 = arith.maximumf %54, %55 : vector<8x32xf32>
    %c7_i32 = arith.constant 7 : i32
    %57 = arith.index_cast %c7_i32 : i32 to index
    %c0_41 = arith.constant 0 : index
    %c0_42 = arith.constant 0 : index
    %58 = vector.load %arg0[%57, %c0_41, %c0_42] : memref<8x8x32xf32, #tpu.memory_space<vmem>>, vector<1x8x32xf32>
    %59 = vector.shape_cast %58 : vector<1x8x32xf32> to vector<8x32xf32>
    %c0_43 = arith.constant 0 : index
    %c0_44 = arith.constant 0 : index
    %60 = vector.load %arg1[%c0_43, %c0_44] : memref<32x32xf32, #tpu.memory_space<vmem>>, vector<32x32xf32>
    %cst_45 = arith.constant dense<0.000000e+00> : vector<8x32xf32>
    %61 = tpu.matmul %56, %60, %cst_45 {dimension_numbers = #tpu.dot_dimension_numbers<[1], [0], [0], [1], [0, 0, 1, 1], [], []>} : vector<8x32xf32>, vector<32x32xf32>, vector<8x32xf32> -> vector<8x32xf32>
    %62 = arith.addf %59, %61 : vector<8x32xf32>
    %cst_46 = arith.constant 0.000000e+00 : f32
    %63 = vector.broadcast %cst_46 : f32 to vector<8x32xf32>
    %64 = arith.maximumf %62, %63 : vector<8x32xf32>
    %c8_i32 = arith.constant 8 : i32
    %65 = vector.extract_strided_slice %64 {offsets = [0, 0], sizes = [4, 32], strides = [1, 1]} : vector<8x32xf32> to vector<4x32xf32>
    %66 = vector.extract_strided_slice %64 {offsets = [4, 0], sizes = [4, 32], strides = [1, 1]} : vector<8x32xf32> to vector<4x32xf32>
    %67 = arith.subf %65, %66 : vector<4x32xf32>
    %68 = arith.mulf %65, %66 : vector<4x32xf32>
    %69 = tpu.concatenate %65, %66, %67, %68 in 1 : vector<4x32xf32>, vector<4x32xf32>, vector<4x32xf32>, vector<4x32xf32> -> vector<4x128xf32>
    %c0_47 = arith.constant 0 : index
    %c0_48 = arith.constant 0 : index
    %70 = vector.load %arg2[%c0_47, %c0_48] : memref<128x64xf32, #tpu.memory_space<vmem>>, vector<128x64xf32>
    %cst_49 = arith.constant dense<0.000000e+00> : vector<4x64xf32>
    %71 = tpu.matmul %69, %70, %cst_49 {dimension_numbers = #tpu.dot_dimension_numbers<[1], [0], [0], [1], [0, 0, 1, 1], [], []>} : vector<4x128xf32>, vector<128x64xf32>, vector<4x64xf32> -> vector<4x64xf32>
    %c0_50 = arith.constant 0 : index
    %c0_51 = arith.constant 0 : index
    %72 = vector.load %arg3[%c0_50, %c0_51] : memref<1x64xf32, #tpu.memory_space<vmem>>, vector<1x64xf32>
    %73 = vector.broadcast %72 : vector<1x64xf32> to vector<4x64xf32>
    %74 = arith.addf %71, %73 : vector<4x64xf32>
    %cst_52 = arith.constant 0.000000e+00 : f32
    %75 = vector.broadcast %cst_52 : f32 to vector<4x64xf32>
    %76 = arith.maximumf %74, %75 : vector<4x64xf32>
    %c0_53 = arith.constant 0 : index
    %c0_54 = arith.constant 0 : index
    %77 = vector.load %arg4[%c0_53, %c0_54] : memref<64x4xf32, #tpu.memory_space<vmem>>, vector<64x4xf32>
    %cst_55 = arith.constant dense<0.000000e+00> : vector<4x4xf32>
    %78 = tpu.matmul %76, %77, %cst_55 {dimension_numbers = #tpu.dot_dimension_numbers<[1], [0], [0], [1], [0, 0, 1, 1], [], []>} : vector<4x64xf32>, vector<64x4xf32>, vector<4x4xf32> -> vector<4x4xf32>
    %c0_56 = arith.constant 0 : index
    %c0_57 = arith.constant 0 : index
    %79 = vector.load %arg5[%c0_56, %c0_57] : memref<1x4xf32, #tpu.memory_space<vmem>>, vector<1x4xf32>
    %80 = vector.broadcast %79 : vector<1x4xf32> to vector<4x4xf32>
    %81 = arith.addf %78, %80 : vector<4x4xf32>
    %c0_58 = arith.constant 0 : index
    %c0_59 = arith.constant 0 : index
    %82 = vector.load %arg6[%c0_58, %c0_59] : memref<4x4xf32, #tpu.memory_space<vmem>>, vector<4x4xf32>
    tpu.vector_store %arg6[%c0_58, %c0_59], %81 {strides = array<i32>} : memref<4x4xf32, #tpu.memory_space<vmem>>, vector<4x4xf32>,
    return
  }
}

</mosaic_0001>

<bundles_post_ra>
// kernel: rnn_classifier_forward.2
= control target key start
LH: loop header
LB: loop body
LE: loop exit
PB: predicated region body
PF: predicated region fallthrough
CT: control target
= control target key end

     0   :  { %vm33_vm0 = vcmask 261120   ;;  %s327_s1 = inlined_call_operand.vmem [shape: f32[32,32], index: 1, kind: input, shape index: {}]   ;;  %s328_s0 = inlined_call_operand.vmem [shape: f32[64,32], index: 0, kind: input, shape index: {}]   ;;  %s329_s2 = inlined_call_operand.vmem [shape: f32[1,32], index: 2, kind: input, shape index: {}]   ;;  %s330_s3 = inlined_call_operand.vmem [shape: f32[64,32], index: 3, kind: output, shape index: {}]  }
   0x1   :  { %v22_v0 = vld [vmem:[%s327_s1] sm:$0xff]  ;;  %v23_v1 = vld [vmem:[%s327_s1 + $0x8] sm:$0xff]  ;;  %v24_v2 = vld [vmem:[%s327_s1 + $0x10] sm:$0xff] }
   0x2   :  { %v216_v3 = vpack.c.bf16 %v23_v1, %v22_v0  ;;  %v25_v4 = vld [vmem:[%s327_s1 + $0x18] sm:$0xff]  ;;  %v14_v5 = vld [vmem:[%s328_s0] sm:$0xff]  ;;  %v15_v8 = vld [vmem:[%s328_s0 + $0x8] sm:$0xff] }
   0x3   :  { %v18_v6 = vld [vmem:[%s328_s0 + $0x20] sm:$0xff]  ;;  %v220_v7 = vpack.c.bf16 %v25_v4, %v24_v2  ;;  %204 = vmatprep.mubr.msk.f32.mxu0 %vm33_vm0, %v14_v5  ;;  %v19_v9 = vld [vmem:[%s328_s0 + $0x28] sm:$0xff]  ;;  %v16_v10 = vld [vmem:[%s328_s0 + $0x10] sm:$0xff] }
   0x4   :  { %210 = vmatprep.mubr.msk.f32.mxu1 %vm33_vm0, %v18_v6  ;;  %217 = vmatprep.subr.bf16.mxu0 %v216_v3  ;;  %v20_v11 = vld [vmem:[%s328_s0 + $0x30] sm:$0xff]  ;;  %v17_v12 = vld [vmem:[%s328_s0 + $0x18] sm:$0xff]  ;;  %v175_v14 = vld [vmem:[%s329_s2] ss:$0 sm:$0xff] }
   0x5   :  { %224 = vmatprep.subr.bf16.mxu1 %v216_v3  ;;  %219 = vmatpush3.bf16.msra.mxu0 %v216_v3  ;;  %v21_v13 = vld [vmem:[%s328_s0 + $0x38] sm:$0xff] }
   0x6   :  { %226 = vmatpush3.bf16.msra.mxu1 %v216_v3  ;;  %221 = vmatprep.subr.bf16.mxu0 %v220_v7 }
   0x7   :  { %225 = vmatprep.subr.bf16.mxu1 %v220_v7 }
   0x9   :  { %223 = vmatpush3.bf16.msra.mxu0 %v220_v7 }
   0xa   :  { %227 = vmatpush3.bf16.msra.mxu1 %v220_v7 }
   0xc   :  { %205 = vmatmul.mubr.msk.f32.vlgmr.msra.gmra.mrb[0].mxu0 %vm33_vm0, %v15_v8 }
   0xd   :  { %211 = vmatmul.mubr.msk.f32.vlgmr.msra.gmra.mrb[0].mxu1 %vm33_vm0, %v19_v9  ;;  %207 = vmatprep.mubr.msk.f32.mxu0 %vm33_vm0, %v16_v10 }
   0xe   :  { %213 = vmatprep.mubr.msk.f32.mxu1 %vm33_vm0, %v20_v11 }
  0x10   :  { %208 = vmatmul.mubr.msk.f32.gmra.mrb[2].mxu0 %vm33_vm0, %v17_v12 }
  0x11   :  { %214 = vmatmul.mubr.msk.f32.gmra.mrb[2].mxu1 %vm33_vm0, %v21_v13 }
  0xdf   :  { %v206_v15 = vpop.f32.mrb[0].mxu0 }
  0xe0   :  { %v212_v16 = vpop.f32.mrb[0].mxu1  ;;  %v130_v17 = vadd.f32 %v206_v15, %v175_v14  ;;  %v124_v19 = vpop.f32.mrb[1].mxu0 }
  0xe1   :  { %v150_v18 = vadd.f32 %v212_v16, %v175_v14  ;;  %v144_v20 = vpop.f32.mrb[1].mxu1  ;;  %v125_v21 = vadd.f32 %v175_v14, %v124_v19 }
  0xe2   :  { %v145_v22 = vadd.f32 %v175_v14, %v144_v20  ;;  %164 = vst.msk [vmem:[%s330_s3 + $0x8] sm:$0xff] %vm33_vm0, %v130_v17 }
  0xe3   :  { %168 = vst.msk [vmem:[%s330_s3 + $0x28] sm:$0xff] %vm33_vm0, %v150_v18  ;;  %163 = vst.msk [vmem:[%s330_s3] sm:$0xff] %vm33_vm0, %v125_v21  ;;  %v209_v23 = vpop.f32.mrb[2].mxu0 }
  0xe4   :  { %167 = vst.msk [vmem:[%s330_s3 + $0x20] sm:$0xff] %vm33_vm0, %v145_v22  ;;  %v215_v24 = vpop.f32.mrb[2].mxu1  ;;  %v140_v25 = vadd.f32 %v209_v23, %v175_v14  ;;  %v134_v27 = vpop.f32.mrb[3].mxu0 }
  0xe5   :  { %v160_v26 = vadd.f32 %v215_v24, %v175_v14  ;;  %v154_v28 = vpop.f32.mrb[3].mxu1  ;;  %v135_v29 = vadd.f32 %v175_v14, %v134_v27 }
  0xe6   :  { %v155_v30 = vadd.f32 %v175_v14, %v154_v28  ;;  %166 = vst.msk [vmem:[%s330_s3 + $0x18] sm:$0xff] %vm33_vm0, %v140_v25 }
  0xe7   :  { %170 = vst.msk [vmem:[%s330_s3 + $0x38] sm:$0xff] %vm33_vm0, %v160_v26  ;;  %165 = vst.msk [vmem:[%s330_s3 + $0x10] sm:$0xff] %vm33_vm0, %v135_v29 }
  0xe8   :  { %169 = vst.msk [vmem:[%s330_s3 + $0x30] sm:$0xff] %vm33_vm0, %v155_v30 }

// kernel: rnn_classifier_forward.3
= control target key start
LH: loop header
LB: loop body
LE: loop exit
PB: predicated region body
PF: predicated region fallthrough
CT: control target
= control target key end

     0   :  { %v1203_v3 = vmov 0.0|0.0   ;;  %vm1204_vm0 = vmmov 0   ;;  %v1205_v6 = vmov 0.0   ;;  %s1450_s0 = inlined_call_operand.vmem [shape: f32[8,8,32], index: 0, kind: input, shape index: {}]   ;;  %s1451_s1 = inlined_call_operand.vmem [shape: f32[32,32], index: 1, kind: input, shape index: {}]   ;;  %s1452_s2 = inlined_call_operand.vmem [shape: f32[128,64], index: 2, kind: input, shape index: {}]   ;;  %s1453_s3 = inlined_call_operand.vmem [shape: f32[1,64], index: 3, kind: input, shape index: {}]   ;;  %s1454_s4 = inlined_call_operand.vmem [shape: f32[64,4], index: 4, kind: input, shape index: {}]   ;;  %s1455_s5 = inlined_call_operand.vmem [shape: f32[1,4], index: 5, kind: input, shape index: {}]   ;;  %s1456_s6 = inlined_call_operand.hbm [shape: f32[4,4], index: 6, kind: output, shape index: {}]  }
   0x1   :  { %v25_v0 = vld [vmem:[%s1451_s1] sm:$0xff]  ;;  %v26_v1 = vld [vmem:[%s1451_s1 + $0x8] sm:$0xff]  ;;  %v27_v2 = vld [vmem:[%s1451_s1 + $0x10] sm:$0xff]  ;;  %1088 = vmatprep.subr.bf16.mxu1 %v1203_v3  ;;  %954 = vmatprep.mubr.msk.f32.mxu1 %vm1204_vm0, %v1205_v6 }
   0x2   :  { %v1255_v4 = vpack.c.bf16 %v26_v1, %v25_v0  ;;  %v28_v5 = vld [vmem:[%s1451_s1 + $0x18] sm:$0xff] }
   0x3   :  { %11 = vsyncpa [#allocation3], 0  ;;  %1100 = vmatprep.subr.bf16.mxu0 %v1203_v3  ;;  %976 = vmatprep.mubr.msk.f32.mxu0 %vm1204_vm0, %v1205_v6  ;;  %v1266_v7 = vpack.c.bf16 %v28_v5, %v27_v2  ;;  %v24_v8 = vld [vmem:[%s1450_s0] sm:$0xff]  ;;  %vm29_vm1 = vcmask 261120   ;;  %v863_v13 = vld [vmem:[%s1450_s0 + $0x8] sm:$0xff]  ;;  %s1206_s12 = smov 32  }
   0x4   :  { %1090 = vmatpush3.bf16.msra.mxu1 %v1255_v4  ;;  %1102 = vmatpush3.bf16.msra.mxu0 %v1255_v4  ;;  %v865_v18 = vld [vmem:[%s1450_s0 + $0x10] sm:$0xff]  ;;  %v867_v23 = vld [vmem:[%s1450_s0 + $0x18] sm:$0xff]  ;;  %v869_v28 = vld [vmem:[%s1450_s0 + $0x20] sm:$0xff]  ;;  %s1207_s13 = smov 96   ;;  %s1208_s14 = smov 64   ;;  %vm661_vm2 = vcmask 523264  }
   0x5   :  { %1091 = vmatprep.subr.bf16.mxu1 %v1203_v3  ;;  %1103 = vmatprep.subr.bf16.mxu0 %v1203_v3  ;;  %v871_v33 = vld [vmem:[%s1450_s0 + $0x28] sm:$0xff]  ;;  %v873_v38 = vld [vmem:[%s1450_s0 + $0x30] sm:$0xff]  ;;  %v665_v43 = vld [vmem:[%s1452_s2] sm:$0xff]  ;;  %vm663_vm3 = vcmask 785408   ;;  %s1209_s23 = smov [#allocation2]   ;;  %vm847_vm4 = vcmask 27648  }
   0x6   :  { %v666_v44 = vld [vmem:[%s1452_s2 + $0x8] sm:$0xff]  ;;  %v667_v45 = vld [vmem:[%s1452_s2 + $0x10] sm:$0xff]  ;;  %v668_v47 = vld [vmem:[%s1452_s2 + $0x18] sm:$0xff]  ;;  %s855_s24 = sshll.u32 %s1209_s23, 4  ;;  %s856_s24 = int_to_ptr.vmem [resolvable:$true] %s855_s24 }
   0x7   :  { %v1137_v46 = vpack.c.bf16 %v666_v44, %v665_v43  ;;  %v1140_v48 = vpack.c.bf16 %v668_v47, %v667_v45  ;;  %v669_v49 = vld [vmem:[%s1452_s2 + $0x20] sm:$0xff]  ;;  %v670_v50 = vld [vmem:[%s1452_s2 + $0x28] sm:$0xff]  ;;  %v671_v52 = vld [vmem:[%s1452_s2 + $0x30] sm:$0xff]  ;;  %p1184_p1 = scmp.lt.s32.totalorder %s856_s24, %s856_s24 }
   0x8   :  { %1093 = vmatpush3.bf16.msra.mxu1 %v1266_v7  ;;  %1105 = vmatpush3.bf16.msra.mxu0 %v1266_v7  ;;  %v1143_v51 = vpack.c.bf16 %v670_v50, %v669_v49  ;;  %v672_v53 = vld [vmem:[%s1452_s2 + $0x38] sm:$0xff]  ;;  %v673_v55 = vld [vmem:[%s1452_s2 + $0x40] sm:$0xff]  ;;  %v674_v56 = vld [vmem:[%s1452_s2 + $0x48] sm:$0xff] }
   0x9   :  { %1094 = vmatprep.subr.bf16.mxu1 %v1203_v3  ;;  %1112 = vmatprep.subr.bf16.mxu0 %v1203_v3  ;;  %v1146_v54 = vpack.c.bf16 %v672_v53, %v671_v52  ;;  %v1149_v57 = vpack.c.bf16 %v674_v56, %v673_v55  ;;  %v675_v58 = vld [vmem:[%s1452_s2 + $0x50] sm:$0xff]  ;;  %v676_v59 = vld [vmem:[%s1452_s2 + $0x58] sm:$0xff]  ;;  %v677_v61 = vld [vmem:[%s1452_s2 + $0x60] sm:$0xff] }
   0xa   :  { %v1152_v60 = vpack.c.bf16 %v676_v59, %v675_v58  ;;  %v678_v62 = vld [vmem:[%s1452_s2 + $0x68] sm:$0xff]  ;;  %v679_v0 = vld [vmem:[%s1452_s2 + $0x70] sm:$0xff]  ;;  %v680_v1 = vld [vmem:[%s1452_s2 + $0x78] sm:$0xff] }
   0xb   :  { %955 = vmatmul.mubr.f32.vlgmr.msra.gmra.mrb[0].mxu1 %v1205_v6  ;;  %v1155_v63 = vpack.c.bf16 %v678_v62, %v677_v61  ;;  %v1158_v2 = vpack.c.bf16 %v680_v1, %v679_v0 }
   0xc   :  { %1096 = vmatpush3.bf16.msra.mxu1 %v1255_v4  ;;  %965 = vmatprep.mubr.msk.f32.mxu1 %vm1204_vm0, %v1205_v6 }
   0xd   :  { %1097 = vmatprep.subr.bf16.mxu1 %v1203_v3 }
  0x10   :  { %1099 = vmatpush3.bf16.msra.mxu1 %v1266_v7 }
  0x11   :  { %1106 = vmatprep.subr.bf16.mxu1 %v1203_v3 }
  0xde   :  { %v99_v9 = vpop.f32.mrb[0].mxu1 }
  0xdf   :  { %v103_v10 = vadd.f32 %v99_v9, %v24_v8  ;;  %v956_v11 = vpop.f32.mrb[1].mxu1  ;;  %v761_v8 = vld [vmem:[%s1454_s4 + $0x10] sm:$0xff] }
  0xe1   :  { %v104_v12 = vmax.f32 %v103_v10, 0.0 }
  0xe3   :  { %966 = vmatmul.mubr.msk.f32.vlgmr.msra.gmra.mrb[2].mxu1 %vm29_vm1, %v104_v12  ;;  %v762_v12 = vld [vmem:[%s1454_s4 + $0x18] sm:$0xff] }
  0xe4   :  { %1108 = vmatpush3.bf16.msra.mxu1 %v1255_v4  ;;  %987 = vmatprep.mubr.msk.f32.mxu1 %vm1204_vm0, %v1205_v6 }
  0xe5   :  { %1109 = vmatprep.subr.bf16.mxu1 %v1203_v3 }
  0xe8   :  { %1111 = vmatpush3.bf16.msra.mxu1 %v1266_v7 }
  0xe9   :  { %1118 = vmatprep.subr.bf16.mxu1 %v1203_v3 }
 0x1b6   :  { %v176_v14 = vpop.f32.mrb[2].mxu1 }
 0x1b7   :  { %v180_v15 = vadd.f32 %v863_v13, %v176_v14  ;;  %v967_v16 = vpop.f32.mrb[3].mxu1  ;;  %v1164_v14 = vpack.c.bf16 %v762_v12, %v761_v8 }
 0x1b8   :  { %v764_v16 = vld [vmem:[%s1454_s4 + $0x28] sm:$0xff] }
 0x1b9   :  { %v181_v17 = vmax.f32 %v180_v15, 0.0  ;;  %v763_v15 = vld [vmem:[%s1454_s4 + $0x20] sm:$0xff] }
 0x1bb   :  { %977 = vmatmul.mubr.msk.f32.vlgmr.msra.gmra.mrb[0].mxu0 %vm29_vm1, %v181_v17 }
 0x1bc   :  { %1114 = vmatpush3.bf16.msra.mxu0 %v1255_v4  ;;  %998 = vmatprep.mubr.msk.f32.mxu0 %vm1204_vm0, %v1205_v6 }
 0x1bd   :  { %1115 = vmatprep.subr.bf16.mxu0 %v1203_v3 }
 0x1c0   :  { %1117 = vmatpush3.bf16.msra.mxu0 %v1266_v7 }
 0x1c1   :  { %1124 = vmatprep.subr.bf16.mxu0 %v1203_v3 }
 0x28e   :  { %v253_v19 = vpop.f32.mrb[0].mxu0 }
 0x28f   :  { %v257_v20 = vadd.f32 %v865_v18, %v253_v19  ;;  %v978_v21 = vpop.f32.mrb[1].mxu0  ;;  %v1167_v19 = vpack.c.bf16 %v764_v16, %v763_v15 }
 0x291   :  { %v258_v22 = vmax.f32 %v257_v20, 0.0 }
 0x293   :  { %988 = vmatmul.mubr.msk.f32.vlgmr.msra.gmra.mrb[4].mxu1 %vm29_vm1, %v258_v22 }
 0x294   :  { %1120 = vmatpush3.bf16.msra.mxu1 %v1255_v4  ;;  %1009 = vmatprep.mubr.msk.f32.mxu1 %vm1204_vm0, %v1205_v6 }
 0x295   :  { %1121 = vmatprep.subr.bf16.mxu1 %v1203_v3 }
 0x298   :  { %1123 = vmatpush3.bf16.msra.mxu1 %v1266_v7 }
 0x299   :  { %1130 = vmatprep.subr.bf16.mxu1 %v1203_v3 }
 0x366   :  { %v330_v24 = vpop.f32.mrb[4].mxu1 }
 0x367   :  { %v334_v25 = vadd.f32 %v867_v23, %v330_v24  ;;  %v989_v26 = vpop.f32.mrb[5].mxu1 }
 0x369   :  { %v335_v27 = vmax.f32 %v334_v25, 0.0 }
 0x36b   :  { %999 = vmatmul.mubr.msk.f32.vlgmr.msra.gmra.mrb[2].mxu0 %vm29_vm1, %v335_v27  ;;  %v765_v27 = vld [vmem:[%s1454_s4 + $0x30] sm:$0xff] }
 0x36c   :  { %1126 = vmatpush3.bf16.msra.mxu0 %v1255_v4  ;;  %1020 = vmatprep.mubr.msk.f32.mxu0 %vm1204_vm0, %v1205_v6 }
 0x36d   :  { %1127 = vmatprep.subr.bf16.mxu0 %v1203_v3 }
 0x370   :  { %1129 = vmatpush3.bf16.msra.mxu0 %v1266_v7 }
 0x371   :  { %1136 = vmatprep.subr.bf16.mxu0 %v1203_v3 }
 0x43e   :  { %v407_v29 = vpop.f32.mrb[2].mxu0 }
 0x43f   :  { %v411_v30 = vadd.f32 %v869_v28, %v407_v29  ;;  %v1000_v31 = vpop.f32.mrb[3].mxu0  ;;  %v766_v28 = vld [vmem:[%s1454_s4 + $0x38] sm:$0xff]  ;;  %v877_v29 = vld [vmem:[%s1453_s3] ss:$0 sm:$0xff] }
 0x441   :  { %v412_v32 = vmax.f32 %v411_v30, 0.0 }
 0x443   :  { %1010 = vmatmul.mubr.msk.f32.vlgmr.msra.gmra.mrb[6].mxu1 %vm29_vm1, %v412_v32 }
 0x444   :  { %1132 = vmatpush3.bf16.msra.mxu1 %v1255_v4  ;;  %1031 = vmatprep.mubr.msk.f32.mxu1 %vm1204_vm0, %v1205_v6  ;;  %v875_v4 = vld [vmem:[%s1450_s0 + $0x38] sm:$0xff] }
 0x445   :  { %1133 = vmatprep.subr.bf16.mxu1 %v1203_v3 }
 0x448   :  { %1135 = vmatpush3.bf16.msra.mxu1 %v1266_v7  ;;  %v760_v7 = vld [vmem:[%s1454_s4 + $0x8] sm:$0xff] }
 0x449   :  { %1160 = vmatprep.subr.bf16.mxu1 %v1203_v3 }
 0x516   :  { %v484_v34 = vpop.f32.mrb[6].mxu1 }
 0x517   :  { %v488_v35 = vadd.f32 %v871_v33, %v484_v34  ;;  %v1011_v36 = vpop.f32.mrb[7].mxu1  ;;  %v878_v34 = vld [vmem:[%s1455_s5] ss:$0 sm:$0xff] }
 0x519   :  { %v489_v37 = vmax.f32 %v488_v35, 0.0 }
 0x51b   :  { %1021 = vmatmul.mubr.msk.f32.vlgmr.msra.gmra.mrb[4].mxu0 %vm29_vm1, %v489_v37 }
 0x51c   :  { %1066 = vmatprep.mubr.msk.f32.mxu0 %vm1204_vm0, %v1205_v6  ;;  %1138 = vmatpush3.bf16.msra.mxu0 %v1137_v46 }
 0x51d   :  { %1139 = vmatprep.subr.bf16.mxu0 %v1203_v3 }
 0x520   :  { %1141 = vmatpush3.bf16.msra.mxu0 %v1140_v48 }
 0x521   :  { %1142 = vmatprep.subr.bf16.mxu0 %v1203_v3 }
 0x524   :  { %1144 = vmatpush3.bf16.msra.mxu0 %v1143_v51 }
 0x525   :  { %1145 = vmatprep.subr.bf16.mxu0 %v1203_v3 }
 0x528   :  { %1147 = vmatpush3.bf16.msra.mxu0 %v1146_v54 }
 0x529   :  { %1148 = vmatprep.subr.bf16.mxu0 %v1203_v3 }
 0x52c   :  { %1150 = vmatpush3.bf16.msra.mxu0 %v1149_v57 }
 0x52d   :  { %1151 = vmatprep.subr.bf16.mxu0 %v1203_v3 }
 0x530   :  { %1153 = vmatpush3.bf16.msra.mxu0 %v1152_v60 }
 0x531   :  { %1154 = vmatprep.subr.bf16.mxu0 %v1203_v3 }
 0x534   :  { %1156 = vmatpush3.bf16.msra.mxu0 %v1155_v63 }
 0x535   :  { %1157 = vmatprep.subr.bf16.mxu0 %v1203_v3 }
 0x538   :  { %1159 = vmatpush3.bf16.msra.mxu0 %v1158_v2 }
 0x5ee   :  { %v561_v39 = vpop.f32.mrb[4].mxu0 }
 0x5ef   :  { %v565_v40 = vadd.f32 %v873_v38, %v561_v39  ;;  %v1022_v41 = vpop.f32.mrb[5].mxu0 }
 0x5f1   :  { %v566_v42 = vmax.f32 %v565_v40, 0.0 }
 0x5f3   :  { %1032 = vmatmul.mubr.msk.f32.vlgmr.msra.gmra.mrb[8].mxu1 %vm29_vm1, %v566_v42 }
 0x5f4   :  { %1085 = vmatprep.mubr.msk.f32.mxu1 %vm1204_vm0, %v1205_v6  ;;  %v759_v6 = vld [vmem:[%s1454_s4] sm:$0xff]  ;;  %s1179_s4 = scalar_lea.vmem %s856_s24, 64 }
 0x5f5   :  { %v1161_v11 = vpack.c.bf16 %v760_v7, %v759_v6  ;;  %p1180_p0 = scmp.ne.s32.totalorder %s856_s24, %s1179_s4  ;;  %p1185_p2 = scmp.lt.s32.totalorder %s1179_s4, %s1179_s4 }
 0x5f7   :  { %1162 = vmatpush3.bf16.msra.mxu1 %v1161_v11  ;;  %p1186_p3 = por %p1185_p2, %p1184_p1 }
 0x5f8   :  { %1163 = vmatprep.subr.bf16.mxu1 %v1203_v3 }
 0x5f9   :  { %p1187_p4 = pnand %p1186_p3, %p1180_p0 }
 0x5fb   :  { %1165 = vmatpush3.bf16.msra.mxu1 %v1164_v14 }
 0x5fc   :  { %1166 = vmatprep.subr.bf16.mxu1 %v1203_v3 }
 0x5ff   :  { %1168 = vmatpush3.bf16.msra.mxu1 %v1167_v19 }
 0x600   :  { %1169 = vmatprep.subr.bf16.mxu1 %v1203_v3  ;;  %v1170_v3 = vpack.c.bf16 %v766_v28, %v765_v27 }
 0x603   :  { %1171 = vmatpush3.bf16.msra.mxu1 %v1170_v3 }
 0x6c6   :  { %v638_v5 = vpop.f32.mrb[8].mxu1 }
 0x6c7   :  { %v642_v9 = vadd.f32 %v875_v4, %v638_v5  ;;  %v1033_v10 = vpop.f32.mrb[9].mxu1 }
 0x6c9   :  { %v643_v13 = vmax.f32 %v642_v9, 0.0 }
 0x6cb   :  { %v645_v17 = vrot.slane %v643_v13, 4 }
 0x6cd   :  { %649 = vrot.lane.b32.xlu0 %v645_v17, %s1206_s12  ;;  %v648_v18 = vmul.f32 %v645_v17, %v643_v13  ;;  %v647_v20 = vsub.f32 %v643_v13, %v645_v17 }
 0x6cf   :  { %657 = vrot.lane.b32.xlu1 %v648_v18, %s1207_s13 }
 0x6d1   :  { %653 = vrot.lane.b32.xlu0 %v647_v20, %s1208_s14 }
 0x73f   :  { %v650_v21 = vpop.permute.xlu0 %649 }
 0x740   :  { %v660_v22 = vsel %vm29_vm1, %v643_v13, %v650_v21 }
 0x741   :  { %v658_v24 = vpop.permute.xlu1 %657 }
 0x743   :  { %v654_v23 = vpop.permute.xlu0 %653 }
 0x744   :  { %v662_v25 = vsel %vm661_vm2, %v660_v22, %v654_v23 }
 0x745   :  { %v664_v26 = vsel %vm663_vm3, %v662_v25, %v658_v24 }
 0x746   :  { %1067 = vmatmul.mubr.f32.vlgmr.msra.gmra.mrb[6].mxu0 %v664_v26 }
 0x819   :  { %v754_v30 = vpop.f32.mrb[6].mxu0 }
 0x81a   :  { %v755_v31 = vadd.f32 %v877_v29, %v754_v30  ;;  %v1068_v32 = vpop.f32.mrb[7].mxu0 }
 0x81c   :  { %v758_v33 = vmax.f32 %v755_v31, 0.0 }
 0x81e   :  { %1086 = vmatmul.mubr.msk.f32.vlgmr.msra.gmra.mrb[10].mxu1 %vm661_vm2, %v758_v33 }
 0x8f1   :  { %v843_v35 = vpop.f32.mrb[10].mxu1 }
 0x8f2   :  { %v844_v36 = vadd.f32 %v878_v34, %v843_v35  ;;  %v1087_v37 = vpop.f32.mrb[11].mxu1 }
 0x8f4   :  { %848 = vst.msk [vmem:[#allocation2] sm:$0xf] %vm847_vm4, %v844_v36 }
 0x8f5   :  { %1190 = shalt.err (!%p1187_p4)
}
 0x8f6   :  { %s1191_s26 = scalar_lea.hbm %s1456_s6, 64 }
 0x8f7   :  { %p1192_p5 = scmp.ne.s32.totalorder %s1456_s6, %s1191_s26  ;;  %p1195_p6 = scmp.lt.u32.totalorder %s1191_s26, %s1456_s6 }
 0x8f9   :  { %p1197_p7 = pnand %p1195_p6, %p1192_p5 }
 0x8fb   :  { %1200 = shalt.err (!%p1197_p7)
}
 0x8fc   :  { %858 = dma.vmem_to_hbm [thread:$0]  %s856_s24, 64, %s1456_s6, [#allocation3]  }
 0x8fd   :  { %1201 = dma.done.wait [#allocation3], 64  }
 0x8fe   :  { %1202 = vsyncadd [#allocation3], 4294967232 }
 0x8ff   :  { %862 = vsyncpa [#allocation3], 1 }

</bundles_post_ra>
